<compile_context>
chip_gen: v6e
topology: v6e:2x2x1
jax: 0.10.0
libtpu: 0.0.40
codegen_flags: <defaults>
</compile_context>

<pallas_src>
import math

import jax
import jax.numpy as jnp
from jax import lax
from jax.experimental import pallas as pl
from jax.experimental.pallas import tpu as pltpu


_SQRT_2_OVER_PI = math.sqrt(2.0 / math.pi)


def _gelu_tanh(x):
    # tanh-approximate GELU: the transcendental lands on the EUP (separate
    # bundle slot) instead of a ~20-op erf polynomial on the VALU.
    return 0.5 * x * (1.0 + jnp.tanh(_SQRT_2_OVER_PI * (x + 0.044715 * x * x * x)))


def mlp_patches_kernel(x_ref, w1_ref, b1_ref, w2_ref, b2_ref, o_ref):
    # x_ref : (tm, Kp)   packed row-tile of the input (Kp = G*P, lane-dense)
    # w1_ref: (Kp, Hp)   block-diagonal W1^T  (bf16)
    # b1_ref: (1, Hp)    G-tiled bias1        (f32)
    # w2_ref: (Hp, Kp)   block-diagonal W2^T  (bf16)
    # b2_ref: (1, Kp)    G-tiled bias2        (f32)
    # o_ref : (tm, Kp)
    x = x_ref[...]

    # bf16 operands on the bf16-native MXU; accumulate in f32.
    h = jnp.dot(x.astype(w1_ref.dtype), w1_ref[...],
                preferred_element_type=jnp.float32)
    h = h + b1_ref[...]
    h = _gelu_tanh(h)
    # Dropout: identity at inference.
    # TODO(synk): training-mode dropout would use pltpu.prng_seed/prng_random_bits.

    # Intermediate deliberately dropped to bf16 for the second MXU pass.
    y = jnp.dot(h.astype(w2_ref.dtype), w2_ref[...],
                preferred_element_type=jnp.float32)
    y = y + b2_ref[...]

    # Residual add in f32 against the un-quantized input.
    o_ref[...] = (x.astype(jnp.float32) + y).astype(o_ref.dtype)


def _round_up(n, m):
    return ((n + m - 1) // m) * m


def _packing_factor(P, H):
    """Smallest G such that (G*P) % 128 == 0, capped so block-diag weights stay small."""
    G = 128 // math.gcd(P, 128)
    if G * P > 1024 or G * H > 4096:
        return 1  # fall back to unpacked layout (block = full array dims is legal)
    return G


def _vmem_budget_bytes():
    """~3/4 of physical VMEM: 96 MiB on v5e/v6e (128 MiB), 48 MiB on v7x (64 MiB)."""
    cap = 64 << 20
    try:
        info = pltpu.get_tpu_info()
        cap = int(getattr(info, "vmem_capacity_bytes", cap)) or cap
    except Exception:
        pass
    return max(32 << 20, (cap * 3) // 4)


def _choose_row_tile(Mp, Kp, Hp, in_itemsize, w_bytes, vmem_budget):
    """Pick the packed-row tile by fixing the step count first (bounds padding)."""
    # Per-packed-row VMEM: double-buffered x and out tiles + f32 hidden
    # intermediate (2x slack for compiler temporaries).
    per_row = 4 * Kp * in_itemsize + 8 * Hp
    avail = max(vmem_budget - 2 * w_bytes - (6 << 20), 0)
    tm_max = max(8, min(8192, (avail // per_row) // 8 * 8))

    # >= 8 grid steps when there is enough work: both v7x TensorCores get a
    # pipelined stream (not 1 exposed step each), and padding <= ~1/n_steps.
    n_steps = max(8, pl.cdiv(Mp, tm_max))
    n_steps = min(n_steps, pl.cdiv(Mp, 8))   # keep >= 8 packed rows per step
    n_steps = max(n_steps, 1)
    tm = min(_round_up(pl.cdiv(Mp, n_steps), 8), tm_max)
    return tm


@jax.jit
def mlp_block_patches(x, w1, b1, w2, b2):
    """x: (..., num_patches). Weights in PyTorch convention:
       w1: (hidden, num_patches), b1: (hidden,)
       w2: (num_patches, hidden), b2: (num_patches,)"""
    orig_shape = x.shape
    P = orig_shape[-1]
    H = w1.shape[0]

    x2d = x.reshape(-1, P)
    M = x2d.shape[0]

    G = _packing_factor(P, H)
    Kp, Hp = G * P, G * H

    # Block-diagonal weights in bf16 (MXU-native); biases stay f32.
    compute_dtype = jnp.bfloat16
    eye = jnp.eye(G, dtype=jnp.float32)
    w1_bd = jnp.kron(eye, w1.T.astype(jnp.float32)).astype(compute_dtype)  # (Kp, Hp)
    w2_bd = jnp.kron(eye, w2.T.astype(jnp.float32)).astype(compute_dtype)  # (Hp, Kp)
    b1_bd = jnp.tile(b1.astype(jnp.float32), G).reshape(1, Hp)
    b2_bd = jnp.tile(b2.astype(jnp.float32), G).reshape(1, Kp)

    in_itemsize = jnp.dtype(x.dtype).itemsize
    w_itemsize = jnp.dtype(compute_dtype).itemsize
    w_bytes = 2 * Kp * Hp * w_itemsize + (Hp + Kp) * 4

    Mp = pl.cdiv(M, G)                      # packed rows needed
    vmem_budget = _vmem_budget_bytes()
    tm = _choose_row_tile(Mp, Kp, Hp, in_itemsize, w_bytes, vmem_budget)
    Mp_pad = _round_up(Mp, tm)
    M_pad = Mp_pad * G

    if M_pad != M:
        # Padding is bounded by < one row tile (~1/n_steps of the work).
        # TODO(synk): a masked last tile would avoid this extra HBM pass entirely.
        x2d = jnp.pad(x2d, ((0, M_pad - M), (0, 0)))
    # Free, row-major packing: each packed row holds G consecutive logical rows.
    xp = x2d.reshape(Mp_pad, Kp)

    grid = (Mp_pad // tm,)

    tile_io = tm * Kp * in_itemsize
    vmem_need = 4 * tile_io + 2 * w_bytes + 2 * tm * Hp * 4 + (4 << 20)
    vmem_limit = int(min(vmem_budget, max(vmem_need, 32 << 20)))

    # Report the FLOPs actually executed (block-diagonal matmuls), not logical.
    cost = pl.CostEstimate(
        flops=4 * Mp_pad * Kp * Hp,
        transcendentals=Mp_pad * Hp,              # one tanh per hidden element
        bytes_accessed=2 * Mp_pad * Kp * in_itemsize + w_bytes,
    )

    out_p = pl.pallas_call(
        mlp_patches_kernel,
        out_shape=jax.ShapeDtypeStruct((Mp_pad, Kp), x.dtype),
        grid_spec=pltpu.PrefetchScalarGridSpec(
            num_scalar_prefetch=0,
            grid=grid,
            in_specs=[
                pl.BlockSpec((tm, Kp), lambda i: (i, 0)),   # packed x row-tile
                # Weights/biases: constant index_map -> never re-DMA'd after
                # the first grid step (resident in VMEM across the grid).
                pl.BlockSpec((Kp, Hp), lambda i: (0, 0)),   # W1 block-diag (full)
                pl.BlockSpec((1, Hp), lambda i: (0, 0)),    # b1 tiled
                pl.BlockSpec((Hp, Kp), lambda i: (0, 0)),   # W2 block-diag (full)
                pl.BlockSpec((1, Kp), lambda i: (0, 0)),    # b2 tiled
            ],
            out_specs=pl.BlockSpec((tm, Kp), lambda i: (i, 0)),
        ),
        compiler_params=pltpu.CompilerParams(
            dimension_semantics=("parallel",),
            vmem_limit_bytes=vmem_limit,
        ),
        cost_estimate=cost,
    )(xp, w1_bd, b1_bd, w2_bd, b2_bd)

    out2d = out_p.reshape(M_pad, P)
    if M_pad != M:
        out2d = out2d[:M]
    return out2d.reshape(orig_shape)


def _reference(x, w1, b1, w2, b2):
    # pure-JAX f32 reference mirroring the PyTorch forward (exact erf GELU)
    h = jnp.einsum("...p,hp->...h", x, w1) + b1
    h = 0.5 * h * (1.0 + lax.erf(h / math.sqrt(2.0)))
    y = jnp.einsum("...h,ph->...p", h, w2) + b2
    return x + y


if __name__ == "__main__":
    # Small shapes consistent with PatchTSMixer: x = (batch, channels, seq, num_patches)
    B, C, S, P = 2, 4, 8, 16
    H = 32  # hidden_size

    key = jax.random.PRNGKey(0)
    kx, k1, k2, k3, k4 = jax.random.split(key, 5)

    x = jax.random.normal(kx, (B, C, S, P), dtype=jnp.float32)

    # Deterministic parameter init (PyTorch Linear shapes).
    bound1 = 1.0 / math.sqrt(P)
    w1 = jax.random.uniform(k1, (H, P), jnp.float32, -bound1, bound1)
    b1 = jax.random.uniform(k2, (H,), jnp.float32, -bound1, bound1)
    bound2 = 1.0 / math.sqrt(H)
    w2 = jax.random.uniform(k3, (P, H), jnp.float32, -bound2, bound2)
    b2 = jax.random.uniform(k4, (P,), jnp.float32, -bound2, bound2)

    out = jax.block_until_ready(mlp_block_patches(x, w1, b1, w2, b2))

    ref = _reference(x, w1, b1, w2, b2)
    assert out.shape == x.shape
    # bf16 matmul operands + tanh-approximate GELU -> looser tolerance vs the
    # exact f32/erf reference (deliberate, per the performance review).
    max_err = float(jnp.max(jnp.abs(out - ref)))
    assert jnp.allclose(out, ref, atol=3e-2, rtol=3e-2), (
        f"mismatch vs reference, max abs err = {max_err}")

    print("KERNEL_OK")
</pallas_src>

<mosaic_0001>
module attributes {stable_mosaic.version = 11 : i64} {
  func.func @mlp_patches_kernel(%arg0: i32, %arg1: memref<8x128xf32, #tpu.memory_space<vmem>>, %arg2: memref<128x256xbf16, #tpu.memory_space<vmem>>, %arg3: memref<1x256xf32, #tpu.memory_space<vmem>>, %arg4: memref<256x128xbf16, #tpu.memory_space<vmem>>, %arg5: memref<1x128xf32, #tpu.memory_space<vmem>>, %arg6: memref<8x128xf32, #tpu.memory_space<vmem>>) attributes {dimension_semantics = [#tpu.dimension_semantics<parallel>], iteration_bounds = array<i64: 1>, scalar_prefetch = 0 : i64, scratch_operands = 0 : i64, tpu.core_type = #tpu.core_type<tc>, window_params = [{transform_indices = @transform_0, window_bounds = array<i64: 8, 128>}, {pipeline_mode = #tpu.pipeline_mode<synchronous>, transform_indices = @transform_1, window_bounds = array<i64: 128, 256>}, {pipeline_mode = #tpu.pipeline_mode<synchronous>, transform_indices = @transform_2, window_bounds = array<i64: 1, 256>}, {pipeline_mode = #tpu.pipeline_mode<synchronous>, transform_indices = @transform_3, window_bounds = array<i64: 256, 128>}, {pipeline_mode = #tpu.pipeline_mode<synchronous>, transform_indices = @transform_4, window_bounds = array<i64: 1, 128>}, {transform_indices = @transform_5, window_bounds = array<i64: 8, 128>}]} {
    %c0 = arith.constant 0 : index
    %c0_0 = arith.constant 0 : index
    %0 = vector.load %arg1[%c0, %c0_0] : memref<8x128xf32, #tpu.memory_space<vmem>>, vector<8x128xf32>
    %1 = arith.truncf %0 : vector<8x128xf32> to vector<8x128xbf16>
    %c0_1 = arith.constant 0 : index
    %c0_2 = arith.constant 0 : index
    %2 = vector.load %arg2[%c0_1, %c0_2] : memref<128x256xbf16, #tpu.memory_space<vmem>>, vector<128x256xbf16>
    %cst = arith.constant dense<0.000000e+00> : vector<8x256xf32>
    %3 = tpu.matmul %1, %2, %cst {dimension_numbers = #tpu.dot_dimension_numbers<[1], [0], [0], [1], [0, 0, 1, 1], [], []>} : vector<8x128xbf16>, vector<128x256xbf16>, vector<8x256xf32> -> vector<8x256xf32>
    %c0_3 = arith.constant 0 : index
    %c0_4 = arith.constant 0 : index
    %4 = vector.load %arg3[%c0_3, %c0_4] : memref<1x256xf32, #tpu.memory_space<vmem>>, vector<1x256xf32>
    %5 = vector.broadcast %4 : vector<1x256xf32> to vector<8x256xf32>
    %6 = arith.addf %3, %5 : vector<8x256xf32>
    %cst_5 = arith.constant 5.000000e-01 : f32
    %7 = vector.broadcast %cst_5 : f32 to vector<8x256xf32>
    %8 = arith.mulf %7, %6 : vector<8x256xf32>
    %cst_6 = arith.constant 4.471500e-02 : f32
    %9 = vector.broadcast %cst_6 : f32 to vector<8x256xf32>
    %10 = arith.mulf %9, %6 : vector<8x256xf32>
    %11 = arith.mulf %10, %6 : vector<8x256xf32>
    %12 = arith.mulf %11, %6 : vector<8x256xf32>
    %13 = arith.addf %6, %12 : vector<8x256xf32>
    %cst_7 = arith.constant 0.797884583 : f32
    %14 = vector.broadcast %cst_7 : f32 to vector<8x256xf32>
    %15 = arith.mulf %14, %13 : vector<8x256xf32>
    %16 = math.tanh %15 : vector<8x256xf32>
    %cst_8 = arith.constant 1.000000e+00 : f32
    %17 = vector.broadcast %cst_8 : f32 to vector<8x256xf32>
    %18 = arith.addf %17, %16 : vector<8x256xf32>
    %19 = arith.mulf %8, %18 : vector<8x256xf32>
    %20 = arith.truncf %19 : vector<8x256xf32> to vector<8x256xbf16>
    %c0_9 = arith.constant 0 : index
    %c0_10 = arith.constant 0 : index
    %21 = vector.load %arg4[%c0_9, %c0_10] : memref<256x128xbf16, #tpu.memory_space<vmem>>, vector<256x128xbf16>
    %cst_11 = arith.constant dense<0.000000e+00> : vector<8x128xf32>
    %22 = tpu.matmul %20, %21, %cst_11 {dimension_numbers = #tpu.dot_dimension_numbers<[1], [0], [0], [1], [0, 0, 1, 1], [], []>} : vector<8x256xbf16>, vector<256x128xbf16>, vector<8x128xf32> -> vector<8x128xf32>
    %c0_12 = arith.constant 0 : index
    %c0_13 = arith.constant 0 : index
    %23 = vector.load %arg5[%c0_12, %c0_13] : memref<1x128xf32, #tpu.memory_space<vmem>>, vector<1x128xf32>
    %24 = vector.broadcast %23 : vector<1x128xf32> to vector<8x128xf32>
    %25 = arith.addf %22, %24 : vector<8x128xf32>
    %26 = arith.addf %0, %25 : vector<8x128xf32>
    %c0_14 = arith.constant 0 : index
    %c0_15 = arith.constant 0 : index
    %27 = vector.load %arg6[%c0_14, %c0_15] : memref<8x128xf32, #tpu.memory_space<vmem>>, vector<8x128xf32>
    tpu.vector_store %arg6[%c0_14, %c0_15], %26 {strides = array<i32>} : memref<8x128xf32, #tpu.memory_space<vmem>>, vector<8x128xf32>,
    return
  }
  func.func @transform_0(%arg0: i32) -> (i32, i32) {
    %c0_i32 = arith.constant 0 : i32
    %c0_i32_0 = arith.constant 0 : i32
    return %arg0, %c0_i32 : i32, i32
  }
  func.func @transform_1(%arg0: i32) -> (i32, i32) {
    %c0_i32 = arith.constant 0 : i32
    %c0_i32_0 = arith.constant 0 : i32
    %c0_i32_1 = arith.constant 0 : i32
    return %c0_i32, %c0_i32_0 : i32, i32
  }
  func.func @transform_2(%arg0: i32) -> (i32, i32) {
    %c0_i32 = arith.constant 0 : i32
    %c0_i32_0 = arith.constant 0 : i32
    %c0_i32_1 = arith.constant 0 : i32
    return %c0_i32, %c0_i32_0 : i32, i32
  }
  func.func @transform_3(%arg0: i32) -> (i32, i32) {
    %c0_i32 = arith.constant 0 : i32
    %c0_i32_0 = arith.constant 0 : i32
    %c0_i32_1 = arith.constant 0 : i32
    return %c0_i32, %c0_i32_0 : i32, i32
  }
  func.func @transform_4(%arg0: i32) -> (i32, i32) {
    %c0_i32 = arith.constant 0 : i32
    %c0_i32_0 = arith.constant 0 : i32
    %c0_i32_1 = arith.constant 0 : i32
    return %c0_i32, %c0_i32_0 : i32, i32
  }
  func.func @transform_5(%arg0: i32) -> (i32, i32) {
    %c0_i32 = arith.constant 0 : i32
    %c0_i32_0 = arith.constant 0 : i32
    return %arg0, %c0_i32 : i32, i32
  }
}

</mosaic_0001>

<bundles_post_ra>
// kernel: tile.13
= control target key start
LH: loop header
LB: loop body
LE: loop exit
PB: predicated region body
PF: predicated region fallthrough
CT: control target
= control target key end

     0   :  { %s22_s0 = inlined_call_operand.vmem [shape: f32[32], index: 0, kind: input, shape index: {}]   ;;  %s23_s1 = inlined_call_operand.vmem [shape: f32[8,32], index: 1, kind: output, shape index: {}]  }
   0x1   :  { %v4_v0 = vld [vmem:[%s22_s0] ss:$0 sm:$0xff] }
   0x2   :  { %5 = vst [vmem:[%s23_s1] sm:$0xff] %v4_v0 }

// kernel: tile.14
= control target key start
LH: loop header
LB: loop body
LE: loop exit
PB: predicated region body
PF: predicated region fallthrough
CT: control target
= control target key end

     0   :  { %s7_s6 = smov 3  ;;  %s14_s9 = smov 3  ;;  %vm4_vm0 = vcmask 261120   ;;  %vm11_vm1 = vcmask 1048320   ;;  %vm18_vm2 = vcmask 785920   ;;  %vm25_vm3 = vcmask 523520   ;;  %s79_s0 = inlined_call_operand.vmem [shape: f32[8,32], index: 0, kind: input, shape index: {}]   ;;  %s80_s1 = inlined_call_operand.vmem [shape: f32[1,256], index: 1, kind: output, shape index: {}]  }
   0x1   :  { %v41_v0 = vld [vmem:[%s79_s0 + $0x3] ss:$4 sm:%s7_s6]   ;;  %s48_s10 = smov 96   ;;  %s21_s11 = smov 3  ;;  %v42_v1 = vld [vmem:[%s79_s0 + $0x2] ss:$4 sm:%s14_s9]  }
   0x2   :  { %9 = vrot.lane.b32.xlu0 %v41_v0, %s48_s10  ;;  %v43_v2 = vld [vmem:[%s79_s0 + $0x1] ss:$4 sm:%s21_s11]   ;;  %s2_s16 = smov 3  ;;  %s49_s17 = smov 32  }
   0x3   :  { %23 = vrot.lane.b32.xlu1 %v43_v2, %s49_s17  ;;  %v3_v3 = vld [vmem:[%s79_s0] ss:$4 sm:%s2_s16]   ;;  %s50_s0 = smov 64  }
   0x4   :  { %5 = vst.msk [vmem:[#allocation0] ss:$8 sm:$0x3] %vm4_vm0, %v3_v3  }
   0x6   :  { %16 = vrot.lane.b32.xlu0 %v42_v1, %s50_s0 }
  0x74   :  { %v10_v4 = vpop.permute.xlu0 %9  }
  0x75   :  { %12 = vst.msk [vmem:[#allocation0] ss:$8 sm:$0x3] %vm11_vm1, %v10_v4   ;;  %v24_v5 = vpop.permute.xlu1 %23  }
  0x78   :  { %v17_v6 = vpop.permute.xlu0 %16  }
  0x79   :  { %19 = vst.msk [vmem:[#allocation0] ss:$8 sm:$0x3] %vm18_vm2, %v17_v6  }
  0x7a   :  { %26 = vst.msk [vmem:[#allocation0] ss:$8 sm:$0x3] %vm25_vm3, %v24_v5  }
  0x81   :  { %v31_v7 = vld [vmem:[#allocation0] sm:$0x1]  ;;  %v36_v8 = vld [vmem:[#allocation0 + $0x8] sm:$0x1] }
  0x82   :  { %34 = vst [vmem:[%s80_s1] sm:$0x1] %v31_v7  ;;  %44 = vst [vmem:[%s80_s1 + $0x1] sm:$0x1] %v36_v8 }

// kernel: tile.18
= control target key start
LH: loop header
LB: loop body
LE: loop exit
PB: predicated region body
PF: predicated region fallthrough
CT: control target
= control target key end

     0   :  { %s22_s0 = inlined_call_operand.vmem [shape: f32[16], index: 0, kind: input, shape index: {}]   ;;  %s23_s1 = inlined_call_operand.vmem [shape: f32[8,16], index: 1, kind: output, shape index: {}]  }
   0x1   :  { %v4_v0 = vld [vmem:[%s22_s0] ss:$0 sm:$0xff] }
   0x2   :  { %5 = vst [vmem:[%s23_s1] sm:$0xff] %v4_v0 }

// kernel: tile.19
= control target key start
LH: loop header
LB: loop body
LE: loop exit
PB: predicated region body
PF: predicated region fallthrough
CT: control target
= control target key end

     0   :  { %s69_s10 = smov 112   ;;  %s70_s11 = smov 80   ;;  %vm3_vm0 = vcmask 130048   ;;  %vm9_vm1 = vcmask 1048448   ;;  %vm15_vm2 = vcmask 917248   ;;  %vm21_vm3 = vcmask 786048   ;;  %s113_s0 = inlined_call_operand.vmem [shape: f32[8,16], index: 0, kind: input, shape index: {}]   ;;  %s114_s1 = inlined_call_operand.vmem [shape: f32[1,128], index: 1, kind: output, shape index: {}]  }
   0x1   :  { %v55_v0 = vld [vmem:[%s113_s0 + $0x7] sm:$0x1]   ;;  %v57_v1 = vld [vmem:[%s113_s0 + $0x5] sm:$0x1]   ;;  %v56_v2 = vld [vmem:[%s113_s0 + $0x6] sm:$0x1]  }
   0x2   :  { %7 = vrot.lane.b32.xlu0 %v55_v0, %s69_s10  ;;  %19 = vrot.lane.b32.xlu1 %v57_v1, %s70_s11  ;;  %v58_v3 = vld [vmem:[%s113_s0 + $0x4] sm:$0x1]   ;;  %v2_v4 = vld [vmem:[%s113_s0] sm:$0x1]   ;;  %s71_s18 = smov 96   ;;  %s72_s19 = smov 64  }
   0x3   :  { %4 = vst.msk [vmem:[#allocation0] sm:$0x1] %vm3_vm0, %v2_v4   ;;  %v59_v5 = vld [vmem:[%s113_s0 + $0x3] sm:$0x1]   ;;  %v60_v6 = vld [vmem:[%s113_s0 + $0x2] sm:$0x1]  }
   0x4   :  { %s73_s24 = smov 48   ;;  %s74_s25 = smov 32   ;;  %v61_v7 = vld [vmem:[%s113_s0 + $0x1] sm:$0x1]   ;;  %vm27_vm4 = vcmask 654848   ;;  %vm33_vm5 = vcmask 523648  }
   0x5   :  { %s75_s0 = smov 16   ;;  %vm39_vm6 = vcmask 392448   ;;  %vm45_vm7 = vcmask 261248  }
   0x6   :  { %13 = vrot.lane.b32.xlu0 %v56_v2, %s71_s18  ;;  %25 = vrot.lane.b32.xlu1 %v58_v3, %s72_s19 }
   0xa   :  { %31 = vrot.lane.b32.xlu0 %v59_v5, %s73_s24  ;;  %37 = vrot.lane.b32.xlu1 %v60_v6, %s74_s25 }
   0xe   :  { %43 = vrot.lane.b32.xlu0 %v61_v7, %s75_s0 }
  0x74   :  { %v8_v8 = vpop.permute.xlu0 %7   ;;  %v20_v9 = vpop.permute.xlu1 %19  }
  0x75   :  { %10 = vst.msk [vmem:[#allocation0] sm:$0x1] %vm9_vm1, %v8_v8  }
  0x78   :  { %v14_v10 = vpop.permute.xlu0 %13   ;;  %v26_v11 = vpop.permute.xlu1 %25  }
  0x79   :  { %16 = vst.msk [vmem:[#allocation0] sm:$0x1] %vm15_vm2, %v14_v10  }
  0x7a   :  { %22 = vst.msk [vmem:[#allocation0] sm:$0x1] %vm21_vm3, %v20_v9  }
  0x7b   :  { %28 = vst.msk [vmem:[#allocation0] sm:$0x1] %vm27_vm4, %v26_v11  }
  0x7c   :  { %v32_v12 = vpop.permute.xlu0 %31   ;;  %v38_v13 = vpop.permute.xlu1 %37  }
  0x7d   :  { %34 = vst.msk [vmem:[#allocation0] sm:$0x1] %vm33_vm5, %v32_v12  }
  0x7e   :  { %40 = vst.msk [vmem:[#allocation0] sm:$0x1] %vm39_vm6, %v38_v13  }
  0x80   :  { %v44_v14 = vpop.permute.xlu0 %43  }
  0x81   :  { %46 = vst.msk [vmem:[#allocation0] sm:$0x1] %vm45_vm7, %v44_v14  }
  0x88   :  { %v51_v15 = vld [vmem:[#allocation0] sm:$0x1] }
  0x89   :  { %54 = vst [vmem:[%s114_s1] sm:$0x1] %v51_v15 }

// kernel: mlp_block_patches.1
= control target key start
LH: loop header
LB: loop body
LE: loop exit
PB: predicated region body
PF: predicated region fallthrough
CT: control target
= control target key end

     0   :  { %v473_v1 = vmov 0   ;;  %v41_v35 = vlaneseq  ;;  %s617_s1 = inlined_call_operand.vmem [shape: bf16[128,256], index: 1, kind: input, shape index: {}]   ;;  %s618_s0 = inlined_call_operand.vmem [shape: f32[8,128], index: 0, kind: input, shape index: {}]   ;;  %s619_s3 = inlined_call_operand.vmem [shape: bf16[256,128], index: 3, kind: input, shape index: {}]   ;;  %s620_s2 = inlined_call_operand.vmem [shape: f32[1,256], index: 2, kind: input, shape index: {}]   ;;  %s621_s4 = inlined_call_operand.vmem [shape: f32[1,128], index: 4, kind: input, shape index: {}]   ;;  %s622_s5 = inlined_call_operand.vmem [shape: f32[8,128], index: 5, kind: output, shape index: {}]  }
   0x1   :  { %v429_v0 = vld [vmem:[%s617_s1 + $0x74] ss:$8 sps:$4 sm:$0xff]   ;;  %163 = vmatprep.mubr.bf16.mxu0 %v473_v1  ;;  %v431_v2 = vld [vmem:[%s617_s1 + $0x70] ss:$8 sps:$4 sm:$0xff]   ;;  %v432_v3 = vld [vmem:[%s617_s1 + $0x64] ss:$8 sps:$4 sm:$0xff]  }
   0x2   :  { %131 = vmatprep.subr.bf16.mxu0 %v429_v0  ;;  %v434_v4 = vld [vmem:[%s617_s1 + $0x60] ss:$8 sps:$4 sm:$0xff]   ;;  %v435_v5 = vld [vmem:[%s617_s1 + $0x54] ss:$8 sps:$4 sm:$0xff]   ;;  %v437_v6 = vld [vmem:[%s617_s1 + $0x50] ss:$8 sps:$4 sm:$0xff]  }
   0x3   :  { %132 = vmatpush1.bf16.msra.mxu0 %v431_v2  ;;  %v438_v7 = vld [vmem:[%s617_s1 + $0x44] ss:$8 sps:$4 sm:$0xff]   ;;  %v440_v8 = vld [vmem:[%s617_s1 + $0x40] ss:$8 sps:$4 sm:$0xff]   ;;  %v441_v9 = vld [vmem:[%s617_s1 + $0x34] ss:$8 sps:$4 sm:$0xff]  }
   0x4   :  { %133 = vmatprep.subr.bf16.mxu0 %v432_v3  ;;  %v443_v10 = vld [vmem:[%s617_s1 + $0x30] ss:$8 sps:$4 sm:$0xff]   ;;  %v444_v11 = vld [vmem:[%s617_s1 + $0x24] ss:$8 sps:$4 sm:$0xff]   ;;  %v446_v12 = vld [vmem:[%s617_s1 + $0x20] ss:$8 sps:$4 sm:$0xff]  }
   0x5   :  { %v447_v13 = vld [vmem:[%s617_s1 + $0x14] ss:$8 sps:$4 sm:$0xff]   ;;  %v449_v14 = vld [vmem:[%s617_s1 + $0x10] ss:$8 sps:$4 sm:$0xff]   ;;  %v450_v15 = vld [vmem:[%s617_s1 + $0x4] ss:$8 sps:$4 sm:$0xff]  }
   0x6   :  { %v452_v16 = vld [vmem:[%s617_s1] ss:$8 sps:$4 sm:$0xff]   ;;  %v453_v19 = vld [vmem:[%s619_s3 + $0x78] sm:$0xff]   ;;  %v455_v21 = vld [vmem:[%s619_s3 + $0x70] sm:$0xff]   ;;  %v42_v36 = vshrl.u32 %v41_v35, 7 }
   0x7   :  { %134 = vmatpush1.bf16.msra.mxu0 %v434_v4  ;;  %v555_v17 = vld [vmem:[%s618_s0] sm:$0xff]  ;;  %v454_v20 = vld [vmem:[%s619_s3 + $0x38] sm:$0xff]   ;;  %406 = vmatprep.subr.bf16.mxu1 %v453_v19  ;;  %v456_v22 = vld [vmem:[%s619_s3 + $0x30] sm:$0xff]  }
   0x8   :  { %135 = vmatprep.subr.bf16.mxu0 %v435_v5  ;;  %v22_v18 = vpack.c.bf16 %v555_v17, %v555_v17  ;;  %407 = vmatpush3.bf16.msra.mxu1 %v454_v20  ;;  %v457_v23 = vld [vmem:[%s619_s3 + $0x68] sm:$0xff]   ;;  %v459_v25 = vld [vmem:[%s619_s3 + $0x60] sm:$0xff]   ;;  %v461_v27 = vld [vmem:[%s619_s3 + $0x58] sm:$0xff]   ;;  %v43_v37 = vsub.s32 0, %v42_v36  ;;  %v47_v39 = vsub.s32 1, %v42_v36 }
   0x9   :  { %408 = vmatprep.subr.bf16.mxu1 %v455_v21  ;;  %v458_v24 = vld [vmem:[%s619_s3 + $0x28] sm:$0xff]   ;;  %v460_v26 = vld [vmem:[%s619_s3 + $0x20] sm:$0xff]   ;;  %v462_v28 = vld [vmem:[%s619_s3 + $0x18] sm:$0xff]  }
   0xa   :  { %v463_v29 = vld [vmem:[%s619_s3 + $0x50] sm:$0xff]   ;;  %v465_v31 = vld [vmem:[%s619_s3 + $0x48] sm:$0xff]   ;;  %v467_v33 = vld [vmem:[%s619_s3 + $0x40] sm:$0xff]  }
   0xb   :  { %136 = vmatpush1.bf16.msra.mxu0 %v437_v6  ;;  %v464_v30 = vld [vmem:[%s619_s3 + $0x10] sm:$0xff]   ;;  %v466_v32 = vld [vmem:[%s619_s3 + $0x8] sm:$0xff]   ;;  %v468_v34 = vld [vmem:[%s619_s3] sm:$0xff]  }
   0xc   :  { %137 = vmatprep.subr.bf16.mxu0 %v438_v7  ;;  %409 = vmatpush3.bf16.msra.mxu1 %v456_v22  ;;  %v39_v38 = vld [vmem:[%s620_s2] sm:$0x3] }
   0xd   :  { %410 = vmatprep.subr.bf16.mxu1 %v457_v23  ;;  %v44_v40 = vrot.slane %v39_v38, %v43_v37  ;;  %v48_v41 = vrot.slane %v39_v38, %v47_v39  ;;  %v389_v5 = vld [vmem:[%s621_s4] ss:$0 sm:$0xff] }
   0xf   :  { %138 = vmatpush1.bf16.msra.mxu0 %v440_v8 }
  0x10   :  { %139 = vmatprep.subr.bf16.mxu0 %v441_v9  ;;  %411 = vmatpush3.bf16.msra.mxu1 %v458_v24 }
  0x11   :  { %412 = vmatprep.subr.bf16.mxu1 %v459_v25 }
  0x13   :  { %140 = vmatpush1.bf16.msra.mxu0 %v443_v10 }
  0x14   :  { %141 = vmatprep.subr.bf16.mxu0 %v444_v11  ;;  %413 = vmatpush3.bf16.msra.mxu1 %v460_v26 }
  0x15   :  { %414 = vmatprep.subr.bf16.mxu1 %v461_v27 }
  0x17   :  { %142 = vmatpush1.bf16.msra.mxu0 %v446_v12 }
  0x18   :  { %143 = vmatprep.subr.bf16.mxu0 %v447_v13  ;;  %415 = vmatpush3.bf16.msra.mxu1 %v462_v28 }
  0x19   :  { %416 = vmatprep.subr.bf16.mxu1 %v463_v29 }
  0x1b   :  { %144 = vmatpush1.bf16.msra.mxu0 %v449_v14 }
  0x1c   :  { %145 = vmatprep.subr.bf16.mxu0 %v450_v15  ;;  %417 = vmatpush3.bf16.msra.mxu1 %v464_v30 }
  0x1d   :  { %418 = vmatprep.subr.bf16.mxu1 %v465_v31 }
  0x1f   :  { %146 = vmatpush1.bf16.msra.mxu0 %v452_v16 }
  0x20   :  { %419 = vmatpush3.bf16.msra.mxu1 %v466_v32 }
  0x21   :  { %420 = vmatprep.subr.bf16.mxu1 %v467_v33 }
  0x22   :  { %164 = vmatmul.mubr.bf16.vlgmr.msra.gmra.mxu0 %v22_v18 }
  0x24   :  { %421 = vmatpush3.bf16.msra.mxu1 %v468_v34 }
  0xe2   :  { %v165_v42 = vpop.f32.mrf.mxu0 }
  0xe3   :  { %v166_v43 = vadd.f32 %v165_v42, %v44_v40 }
  0xe4   :  { %v167_v44 = vpop.f32.mrf.mxu0 }
  0xe5   :  { %v174_v45 = vmul.f32 0.044715, %v166_v43  ;;  %v168_v46 = vadd.f32 %v167_v44, %v48_v41  ;;  %v172_v61 = vmul.f32 0.5, %v166_v43 }
  0xe6   :  { %v169_v47 = vpop.f32.mrf.mxu0 }
  0xe7   :  { %v176_v48 = vmul.f32 %v174_v45, %v166_v43  ;;  %v175_v49 = vmul.f32 0.044715, %v168_v46  ;;  %v173_v62 = vmul.f32 0.5, %v168_v46 }
  0xe8   :  { %v170_v50 = vpop.f32.mrf.mxu0 }
  0xe9   :  { %v177_v51 = vmul.f32 %v175_v49, %v168_v46  ;;  %v178_v52 = vmul.f32 %v176_v48, %v166_v43 }
  0xeb   :  { %v179_v53 = vmul.f32 %v177_v51, %v168_v46  ;;  %v180_v54 = vadd.f32 %v178_v52, %v166_v43 }
  0xed   :  { %v181_v55 = vadd.f32 %v179_v53, %v168_v46  ;;  %v182_v56 = vmul.f32 0.7978846, %v180_v54 }
  0xef   :  { %v183_v57 = vmul.f32 0.7978846, %v181_v55  ;;  %469 = vtanh.f32 %v182_v56 }
  0xf1   :  { %471 = vtanh.f32 %v183_v57 }
  0xfc   :  { %v470_v58 = vpop.eup %469 }
  0xfd   :  { %v186_v59 = vadd.f32 1.0, %v470_v58 }
  0xfe   :  { %v472_v60 = vpop.eup %471 }
  0xff   :  { %v187_v63 = vadd.f32 1.0, %v472_v60  ;;  %v188_v0 = vmul.f32 %v186_v59, %v172_v61 }
 0x101   :  { %v189_v1 = vmul.f32 %v187_v63, %v173_v62  ;;  %v190_v3 = vpack.c.bf16 %v188_v0, %v188_v0 }
 0x103   :  { %v191_v2 = vpack.c.bf16 %v189_v1, %v189_v1 }
 0x105   :  { %359 = vmatprep.mubr.bf16.mxu1 %v191_v2 }
 0x106   :  { %360 = vmatmul.mubr.bf16.vlgmr.msra.gmra.mxu1 %v190_v3 }
 0x1c6   :  { %v422_v4 = vpop.f32.mrf.mxu1 }
 0x1c8   :  { %v423_v6 = vpop.f32.mrf.mxu1 }
 0x1c9   :  { %v424_v7 = vadd.f32 %v423_v6, %v422_v4 }
 0x1ca   :  { %v425_v8 = vpop.f32.mrf.mxu1 }
 0x1cb   :  { %v362_v9 = vadd.f32 %v424_v7, %v389_v5 }
 0x1cc   :  { %v426_v10 = vpop.f32.mrf.mxu1 }
 0x1cd   :  { %v367_v11 = vadd.f32 %v362_v9, %v555_v17 }
 0x1cf   :  { %368 = vst [vmem:[%s622_s5] sm:$0xff] %v367_v11 }

</bundles_post_ra>
